<compile_context>
chip_gen: v5e
topology: v5e:2x2
jax: 0.10.0
libtpu: 0.0.40
codegen_flags: <defaults>
</compile_context>

<pallas_src>
import functools

import jax
import jax.numpy as jnp
from jax import lax
from jax.experimental import pallas as pl
from jax.experimental.pallas import tpu as pltpu


_VMEM_LIMIT = 32 * 1024 * 1024  # explicit scoped-VMEM budget, safe on v5e/v6e/v7x


def _choose_tile(dim, target, align):
    """Largest divisor of `dim` that is <= target and a multiple of `align`.

    Falls back to the full dimension, which is always a legal TPU block size.
    """
    if dim <= target:
        return dim
    t = (target // align) * align
    while t >= align:
        if dim % t == 0:
            return t
        t -= align
    return dim


# --------------------------- tiled projection GEMMs ---------------------------

def _mm_accumulate(x_ref, w_ref, acc_ref):
    @pl.when(pl.program_id(2) == 0)
    def _():
        acc_ref[...] = jnp.zeros_like(acc_ref)

    # y += x @ w.T  (w kept in PyTorch (out, in) layout; contract on "in")
    acc_ref[...] += lax.dot_general(
        x_ref[...], w_ref[...],
        dimension_numbers=(((1,), (1,)), ((), ())),
        preferred_element_type=jnp.float32)


def _matmul_kernel(x_ref, w_ref, o_ref, acc_ref):
    _mm_accumulate(x_ref, w_ref, acc_ref)

    @pl.when(pl.program_id(2) == pl.num_programs(2) - 1)
    def _():
        o_ref[...] = acc_ref[...].astype(o_ref.dtype)


def _matmul_bias_kernel(x_ref, w_ref, b_ref, o_ref, acc_ref):
    _mm_accumulate(x_ref, w_ref, acc_ref)

    @pl.when(pl.program_id(2) == pl.num_programs(2) - 1)
    def _():
        o_ref[...] = (acc_ref[...] + b_ref[...]).astype(o_ref.dtype)


def _pallas_linear(x, w, b=None, *, tm=512, tn=512, tk=512):
    """y = x @ w.T (+ b), with w in PyTorch (out, in) layout."""
    M, K = x.shape
    N, K2 = w.shape
    assert K == K2, "weight inner dim mismatch"

    tm = _choose_tile(M, tm, 8)
    tn = _choose_tile(N, tn, 128)
    tk = _choose_tile(K, tk, 128)
    grid = (M // tm, N // tn, K // tk)

    in_specs = [
        pl.BlockSpec((tm, tk), lambda i, j, k: (i, k)),   # activations
        pl.BlockSpec((tn, tk), lambda i, j, k: (j, k)),   # weight (out, in)
    ]
    args = [x, w]
    kernel = _matmul_kernel
    if b is not None:
        in_specs.append(pl.BlockSpec((1, tn), lambda i, j, k: (0, j)))
        args.append(b.reshape(1, N))
        kernel = _matmul_bias_kernel

    return pl.pallas_call(
        kernel,
        out_shape=jax.ShapeDtypeStruct((M, N), x.dtype),
        grid=grid,
        in_specs=in_specs,
        out_specs=pl.BlockSpec((tm, tn), lambda i, j, k: (i, j)),
        scratch_shapes=[pltpu.VMEM((tm, tn), jnp.float32)],
        compiler_params=pltpu.CompilerParams(
            dimension_semantics=("parallel", "parallel", "arbitrary"),
            vmem_limit_bytes=_VMEM_LIMIT),
    )(*args)


# ------------------------------ fused attention -------------------------------

def _attn_kernel(q_ref, k_ref, v_ref, o_ref, *, num_heads, scale):
    # One batch element per grid step; each ref block is (1, N, C) and holds
    # ALL heads side by side on the lane axis (lane-dense loads/stores).
    q = q_ref[0]                        # (N, C)
    k = k_ref[0]
    v = v_ref[0]
    dh = q.shape[-1] // num_heads

    outs = []
    for h in range(num_heads):          # unrolled; static lane slices per head
        sl = slice(h * dh, (h + 1) * dh)
        qh, kh, vh = q[:, sl], k[:, sl], v[:, sl]

        # s = q @ k^T via dot_general (trans_b): no explicit XLU transpose.
        s = lax.dot_general(
            qh, kh, dimension_numbers=(((1,), (1,)), ((), ())),
            preferred_element_type=jnp.float32) * scale        # (N, N) f32

        m = jnp.max(s, axis=-1, keepdims=True)
        p = jnp.exp(s - m)
        denom = jnp.sum(p, axis=-1, keepdims=True)
        p = p * pl.reciprocal(denom, approx=True)               # EUP, not VPU divide

        oh = jnp.dot(p.astype(vh.dtype), vh,
                     preferred_element_type=jnp.float32)        # (N, dh)
        outs.append(oh)

    # Single lane-dense store in merged-head (N, C) layout.
    o_ref[0] = jnp.concatenate(outs, axis=-1).astype(o_ref.dtype)


def _pallas_attention(qkv, num_heads, scale):
    # qkv: (B, N, 3C) packed activations straight from the QKV projection.
    B, N, C3 = qkv.shape
    C = C3 // 3
    return pl.pallas_call(
        functools.partial(_attn_kernel, num_heads=num_heads, scale=scale),
        out_shape=jax.ShapeDtypeStruct((B, N, C), qkv.dtype),
        grid=(B,),
        in_specs=[
            pl.BlockSpec((1, N, C), lambda b: (b, 0, 0)),   # q columns [0, C)
            pl.BlockSpec((1, N, C), lambda b: (b, 0, 1)),   # k columns [C, 2C)
            pl.BlockSpec((1, N, C), lambda b: (b, 0, 2)),   # v columns [2C, 3C)
        ],
        out_specs=pl.BlockSpec((1, N, C), lambda b: (b, 0, 0)),
        compiler_params=pltpu.CompilerParams(
            dimension_semantics=("parallel",),
            vmem_limit_bytes=_VMEM_LIMIT),
    )(qkv, qkv, qkv)


# ------------------------------- forward pass ---------------------------------

def multi_head_attention(x, w_qkv, w_proj, b_proj, num_heads):
    """Forward pass matching the PyTorch MultiHeadAttention (dropout=0)."""
    B, N, C = x.shape
    head_dim = C // num_heads
    scale = head_dim ** (-0.5)

    # QKV projection (tiled Pallas GEMM). Weight stays (3C, C) = (out, in).
    qkv = _pallas_linear(x.reshape(B * N, C), w_qkv)        # (B*N, 3C)
    qkv = qkv.reshape(B, N, 3 * C)                          # free reshape

    # Fused per-batch, all-heads attention; output already merged as (B, N, C).
    o = _pallas_attention(qkv, num_heads, scale)

    # Output projection + bias (tiled Pallas GEMM).
    out = _pallas_linear(o.reshape(B * N, C), w_proj, b_proj)
    return out.reshape(B, N, C)


# ----------------------------- reference (JAX) --------------------------------

def _reference(x, w_qkv, w_proj, b_proj, num_heads):
    B, N, C = x.shape
    dh = C // num_heads
    scale = dh ** (-0.5)
    qkv = (x @ w_qkv.T).reshape(B, N, 3, num_heads, dh)
    qkv = jnp.transpose(qkv, (2, 0, 3, 1, 4))
    q, k, v = qkv[0], qkv[1], qkv[2]
    attn = jnp.einsum("bhqd,bhkd->bhqk", q, k) * scale
    attn = jax.nn.softmax(attn, axis=-1)
    o = jnp.einsum("bhqk,bhkd->bhqd", attn, v)
    o = jnp.transpose(o, (0, 2, 1, 3)).reshape(B, N, C)
    return o @ w_proj.T + b_proj


# ---------------------------------- main ---------------------------------------

if __name__ == "__main__":
    # Small but TPU-friendly shapes (embed_dim a multiple of 128 for lane-dense
    # blocks, as in the real module where embed_dim=768).
    B, N, C, H = 2, 16, 128, 4          # head_dim = 32
    key = jax.random.PRNGKey(0)
    kx, kq, kp, kb = jax.random.split(key, 4)

    x = jax.random.normal(kx, (B, N, C), dtype=jnp.float32)
    # PyTorch nn.Linear convention: weight shape = (out_features, in_features).
    w_qkv = jax.random.normal(kq, (3 * C, C), dtype=jnp.float32) * 0.05
    w_proj = jax.random.normal(kp, (C, C), dtype=jnp.float32) * 0.05
    b_proj = jax.random.normal(kb, (C,), dtype=jnp.float32) * 0.05

    out = multi_head_attention(x, w_qkv, w_proj, b_proj, num_heads=H)
    out = jax.block_until_ready(out)

    ref = _reference(x, w_qkv, w_proj, b_proj, num_heads=H)
    assert out.shape == (B, N, C)
    # Tolerance accounts for the approximate (EUP) softmax reciprocal.
    assert jnp.allclose(out, ref, atol=2e-3, rtol=2e-3), "mismatch vs reference"

    print("KERNEL_OK")
</pallas_src>

<mosaic_0001>
module attributes {stable_mosaic.version = 11 : i64} {
  func.func @_matmul_kernel(%arg0: i32, %arg1: i32, %arg2: i32, %arg3: memref<32x128xf32, #tpu.memory_space<vmem>>, %arg4: memref<384x128xf32, #tpu.memory_space<vmem>>, %arg5: memref<32x384xf32, #tpu.memory_space<vmem>>, %arg6: memref<32x384xf32, #tpu.memory_space<vmem>>) attributes {dimension_semantics = [#tpu.dimension_semantics<parallel>, #tpu.dimension_semantics<parallel>, #tpu.dimension_semantics<arbitrary>], iteration_bounds = array<i64: 1, 1, 1>, scalar_prefetch = 0 : i64, scratch_operands = 1 : i64, tpu.core_type = #tpu.core_type<tc>, window_params = [{transform_indices = @transform_0, window_bounds = array<i64: 32, 128>}, {transform_indices = @transform_1, window_bounds = array<i64: 384, 128>}, {transform_indices = @transform_2, window_bounds = array<i64: 32, 384>}]} {
    %c0_i32 = arith.constant 0 : i32
    %0 = arith.cmpi eq, %arg2, %c0_i32 : i32
    %1 = arith.extui %0 : i1 to i32
    %c0_i32_0 = arith.constant 0 : i32
    %2 = arith.cmpi ne, %1, %c0_i32_0 : i32
    scf.if %2 {
      %cst_10 = arith.constant 0.000000e+00 : f32
      %12 = vector.broadcast %cst_10 : f32 to vector<32x384xf32>
      %c0_11 = arith.constant 0 : index
      %c0_12 = arith.constant 0 : index
      %13 = vector.load %arg6[%c0_11, %c0_12] : memref<32x384xf32, #tpu.memory_space<vmem>>, vector<32x384xf32>
      tpu.vector_store %arg6[%c0_11, %c0_12], %12 {strides = array<i32>} : memref<32x384xf32, #tpu.memory_space<vmem>>, vector<32x384xf32>,
    } else {
    }
    %c0 = arith.constant 0 : index
    %c0_1 = arith.constant 0 : index
    %3 = vector.load %arg6[%c0, %c0_1] : memref<32x384xf32, #tpu.memory_space<vmem>>, vector<32x384xf32>
    %c0_2 = arith.constant 0 : index
    %c0_3 = arith.constant 0 : index
    %4 = vector.load %arg3[%c0_2, %c0_3] : memref<32x128xf32, #tpu.memory_space<vmem>>, vector<32x128xf32>
    %c0_4 = arith.constant 0 : index
    %c0_5 = arith.constant 0 : index
    %5 = vector.load %arg4[%c0_4, %c0_5] : memref<384x128xf32, #tpu.memory_space<vmem>>, vector<384x128xf32>
    %cst = arith.constant dense<0.000000e+00> : vector<32x384xf32>
    %6 = tpu.matmul %4, %5, %cst {dimension_numbers = #tpu.dot_dimension_numbers<[1], [1], [0], [0], [0, 0, 1, 0], [], []>} : vector<32x128xf32>, vector<384x128xf32>, vector<32x384xf32> -> vector<32x384xf32>
    %7 = arith.addf %3, %6 : vector<32x384xf32>
    %c0_6 = arith.constant 0 : index
    %c0_7 = arith.constant 0 : index
    %8 = vector.load %arg6[%c0_6, %c0_7] : memref<32x384xf32, #tpu.memory_space<vmem>>, vector<32x384xf32>
    tpu.vector_store %arg6[%c0_6, %c0_7], %7 {strides = array<i32>} : memref<32x384xf32, #tpu.memory_space<vmem>>, vector<32x384xf32>,
    %c0_i32_8 = arith.constant 0 : i32
    %9 = arith.cmpi eq, %arg2, %c0_i32_8 : i32
    %10 = arith.extui %9 : i1 to i32
    %c0_i32_9 = arith.constant 0 : i32
    %11 = arith.cmpi ne, %10, %c0_i32_9 : i32
    scf.if %11 {
      %c0_10 = arith.constant 0 : index
      %c0_11 = arith.constant 0 : index
      %12 = vector.load %arg6[%c0_10, %c0_11] : memref<32x384xf32, #tpu.memory_space<vmem>>, vector<32x384xf32>
      %c0_12 = arith.constant 0 : index
      %c0_13 = arith.constant 0 : index
      %13 = vector.load %arg5[%c0_12, %c0_13] : memref<32x384xf32, #tpu.memory_space<vmem>>, vector<32x384xf32>
      tpu.vector_store %arg5[%c0_12, %c0_13], %12 {strides = array<i32>} : memref<32x384xf32, #tpu.memory_space<vmem>>, vector<32x384xf32>,
    } else {
    }
    return
  }
  func.func @transform_0(%arg0: i32, %arg1: i32, %arg2: i32) -> (i32, i32) {
    %c0_i32 = arith.constant 0 : i32
    return %arg0, %arg2 : i32, i32
  }
  func.func @transform_1(%arg0: i32, %arg1: i32, %arg2: i32) -> (i32, i32) {
    %c0_i32 = arith.constant 0 : i32
    return %arg1, %arg2 : i32, i32
  }
  func.func @transform_2(%arg0: i32, %arg1: i32, %arg2: i32) -> (i32, i32) {
    %c0_i32 = arith.constant 0 : i32
    return %arg0, %arg1 : i32, i32
  }
}

</mosaic_0001>

<bundles_post_ra>
// kernel: tpu_custom_call.1
= control target key start
LH: loop header
LB: loop body
LE: loop exit
PB: predicated region body
PF: predicated region fallthrough
CT: control target
= control target key end

     0   :  { %7 = vsyncpa [#allocation4], 0  ;;  %s414_s0 = inlined_call_operand.hbm [shape: f32[32,128], index: 0, kind: input, shape index: {}]   ;;  %s415_s1 = inlined_call_operand.hbm [shape: f32[384,128], index: 1, kind: input, shape index: {}]   ;;  %s416_s2 = inlined_call_operand.hbm [shape: f32[32,384], index: 2, kind: output, shape index: {}]  }
   0x1   :  { %8 = vsyncpa [#allocation7], 0 }
   0x2   :  { %9 = vsyncpa [#allocation5], 0  ;;  %s14_s11 = sshll.u32 %s414_s0, 4  ;;  %s383_s12 = smov [#allocation3]   ;;  %s15_s11 = int_to_ptr.hbm [resolvable:$true] %s14_s11 }
   0x3   :  { %s16_s13 = sshll.u32 %s383_s12, 4  ;;  %s27_s16 = sshll.u32 %s415_s1, 4  ;;  %s17_s13 = int_to_ptr.vmem [resolvable:$true] %s16_s13  ;;  %s28_s16 = int_to_ptr.hbm [resolvable:$true] %s27_s16 }
   0x4   :  { %s384_s17 = smov 128   ;;  %s385_s18 = smov 8  }
   0x5   :  { %22 = dma.hbm_to_vmem [thread:$0]  %s15_s11, 512, %s17_s13, [#allocation4], %s384_s17, %s384_s17, %s385_s18  }
   0x6   :  { %s386_s19 = smov [#allocation6]  }
   0x7   :  { %s29_s20 = sshll.u32 %s386_s19, 4  ;;  %s30_s20 = int_to_ptr.vmem [resolvable:$true] %s29_s20 }
   0x8   :  { %35 = dma.hbm_to_vmem [thread:$0]  %s28_s16, 6144, %s30_s20, [#allocation7], %s384_s17, %s384_s17, %s385_s18  }
   0x9   :  { %377 = dma.done.wait [#allocation4], 512  }
   0xa   :  { %378 = vsyncadd [#allocation4], 4294966784 }
   0xb   :  { %379 = dma.done.wait [#allocation7], 6144  }
   0xc   :  { %380 = vsyncadd [#allocation7], 4294961152  ;;  %v123_v0 = vld [vmem:[#allocation6 + $0x178] sm:$0xff]  ;;  %v122_v3 = vld [vmem:[#allocation6 + $0x170] sm:$0xff]  ;;  %s387_s0 = smov [#allocation8]   ;;  %s268_s23 = sshll.u32 %s416_s2, 4  ;;  %s269_s23 = int_to_ptr.hbm [resolvable:$true] %s268_s23 }
   0xd   :  { %v107_v1 = vld [vmem:[#allocation6 + $0xf8] sm:$0xff]  ;;  %182 = vmatpush.xpose.msra.mxu2 %v123_v0  ;;  %v106_v4 = vld [vmem:[#allocation6 + $0xf0] sm:$0xff]  ;;  %v121_v6 = vld [vmem:[#allocation6 + $0x168] sm:$0xff]  ;;  %s266_s1 = sshll.u32 %s387_s0, 4  ;;  %s388_s24 = smov 384   ;;  %s267_s1 = int_to_ptr.vmem [resolvable:$true] %s266_s1 }
   0xe   :  { %153 = vmatpush.xpose.msra.mxu1 %v107_v1  ;;  %v91_v2 = vld [vmem:[#allocation6 + $0x78] sm:$0xff]  ;;  %v90_v5 = vld [vmem:[#allocation6 + $0x70] sm:$0xff]  ;;  %v105_v7 = vld [vmem:[#allocation6 + $0xe8] sm:$0xff]  ;;  %s389_s25 = smov 24  }
   0xf   :  { %282 = vmatpush.xpose.msra.mxu3 %v91_v2  ;;  %124 = vmatpush.xpose.msra.mxu0 %v91_v2  ;;  %v89_v8 = vld [vmem:[#allocation6 + $0x68] sm:$0xff]  ;;  %v120_v9 = vld [vmem:[#allocation6 + $0x160] sm:$0xff]  ;;  %v119_v12 = vld [vmem:[#allocation6 + $0x158] sm:$0xff] }
  0x10   :  { %v104_v10 = vld [vmem:[#allocation6 + $0xe0] sm:$0xff]  ;;  %v103_v13 = vld [vmem:[#allocation6 + $0xd8] sm:$0xff]  ;;  %v118_v15 = vld [vmem:[#allocation6 + $0x150] sm:$0xff] }
  0x11   :  { %183 = vmatpush.xpose.msra.mxu2 %v122_v3  ;;  %v88_v11 = vld [vmem:[#allocation6 + $0x60] sm:$0xff]  ;;  %v87_v14 = vld [vmem:[#allocation6 + $0x58] sm:$0xff]  ;;  %v102_v16 = vld [vmem:[#allocation6 + $0xd0] sm:$0xff] }
  0x12   :  { %154 = vmatpush.xpose.msra.mxu1 %v106_v4  ;;  %v86_v17 = vld [vmem:[#allocation6 + $0x50] sm:$0xff]  ;;  %v117_v18 = vld [vmem:[#allocation6 + $0x148] sm:$0xff]  ;;  %v116_v21 = vld [vmem:[#allocation6 + $0x140] sm:$0xff] }
  0x13   :  { %283 = vmatpush.xpose.msra.mxu3 %v90_v5  ;;  %125 = vmatpush.xpose.msra.mxu0 %v90_v5  ;;  %v101_v19 = vld [vmem:[#allocation6 + $0xc8] sm:$0xff]  ;;  %v100_v22 = vld [vmem:[#allocation6 + $0xc0] sm:$0xff]  ;;  %v115_v24 = vld [vmem:[#allocation6 + $0x138] sm:$0xff] }
  0x14   :  { %v85_v20 = vld [vmem:[#allocation6 + $0x48] sm:$0xff]  ;;  %v84_v23 = vld [vmem:[#allocation6 + $0x40] sm:$0xff]  ;;  %v99_v25 = vld [vmem:[#allocation6 + $0xb8] sm:$0xff] }
  0x15   :  { %184 = vmatpush.xpose.msra.mxu2 %v121_v6  ;;  %v83_v26 = vld [vmem:[#allocation6 + $0x38] sm:$0xff]  ;;  %v114_v27 = vld [vmem:[#allocation6 + $0x130] sm:$0xff]  ;;  %v113_v30 = vld [vmem:[#allocation6 + $0x128] sm:$0xff] }
  0x16   :  { %155 = vmatpush.xpose.msra.mxu1 %v105_v7  ;;  %v98_v28 = vld [vmem:[#allocation6 + $0xb0] sm:$0xff]  ;;  %v97_v31 = vld [vmem:[#allocation6 + $0xa8] sm:$0xff]  ;;  %v112_v33 = vld [vmem:[#allocation6 + $0x120] sm:$0xff] }
  0x17   :  { %284 = vmatpush.xpose.msra.mxu3 %v89_v8  ;;  %126 = vmatpush.xpose.msra.mxu0 %v89_v8  ;;  %v82_v29 = vld [vmem:[#allocation6 + $0x30] sm:$0xff]  ;;  %v81_v32 = vld [vmem:[#allocation6 + $0x28] sm:$0xff]  ;;  %v96_v34 = vld [vmem:[#allocation6 + $0xa0] sm:$0xff] }
  0x18   :  { %v80_v35 = vld [vmem:[#allocation6 + $0x20] sm:$0xff]  ;;  %v111_v36 = vld [vmem:[#allocation6 + $0x118] sm:$0xff]  ;;  %v110_v39 = vld [vmem:[#allocation6 + $0x110] sm:$0xff] }
  0x19   :  { %185 = vmatpush.xpose.msra.mxu2 %v120_v9  ;;  %v95_v37 = vld [vmem:[#allocation6 + $0x98] sm:$0xff]  ;;  %v94_v40 = vld [vmem:[#allocation6 + $0x90] sm:$0xff]  ;;  %v109_v42 = vld [vmem:[#allocation6 + $0x108] sm:$0xff] }
  0x1a   :  { %156 = vmatpush.xpose.msra.mxu1 %v104_v10  ;;  %v79_v38 = vld [vmem:[#allocation6 + $0x18] sm:$0xff]  ;;  %v78_v41 = vld [vmem:[#allocation6 + $0x10] sm:$0xff]  ;;  %v93_v43 = vld [vmem:[#allocation6 + $0x88] sm:$0xff] }
  0x1b   :  { %285 = vmatpush.xpose.msra.mxu3 %v88_v11  ;;  %127 = vmatpush.xpose.msra.mxu0 %v88_v11  ;;  %v77_v44 = vld [vmem:[#allocation6 + $0x8] sm:$0xff]  ;;  %v108_v45 = vld [vmem:[#allocation6 + $0x100] sm:$0xff]  ;;  %v74_v50 = vld [vmem:[#allocation3 + $0x10] sm:$0xff] }
  0x1c   :  { %v92_v46 = vld [vmem:[#allocation6 + $0x80] sm:$0xff]  ;;  %v73_v49 = vld [vmem:[#allocation3 + $0x8] sm:$0xff]  ;;  %v75_v51 = vld [vmem:[#allocation3 + $0x18] sm:$0xff] }
  0x1d   :  { %186 = vmatpush.xpose.msra.mxu2 %v119_v12  ;;  %v76_v47 = vld [vmem:[#allocation6] sm:$0xff] }
  0x1e   :  { %157 = vmatpush.xpose.msra.mxu1 %v103_v13  ;;  %v72_v48 = vld [vmem:[#allocation3] sm:$0xff] }
  0x1f   :  { %286 = vmatpush.xpose.msra.mxu3 %v87_v14  ;;  %128 = vmatpush.xpose.msra.mxu0 %v87_v14 }
  0x21   :  { %187 = vmatpush.xpose.msra.mxu2 %v118_v15 }
  0x22   :  { %158 = vmatpush.xpose.msra.mxu1 %v102_v16 }
  0x23   :  { %287 = vmatpush.xpose.msra.mxu3 %v86_v17  ;;  %129 = vmatpush.xpose.msra.mxu0 %v86_v17 }
  0x25   :  { %188 = vmatpush.xpose.msra.mxu2 %v117_v18 }
  0x26   :  { %159 = vmatpush.xpose.msra.mxu1 %v101_v19 }
  0x27   :  { %288 = vmatpush.xpose.msra.mxu3 %v85_v20  ;;  %130 = vmatpush.xpose.msra.mxu0 %v85_v20 }
  0x29   :  { %189 = vmatpush.xpose.msra.mxu2 %v116_v21 }
  0x2a   :  { %160 = vmatpush.xpose.msra.mxu1 %v100_v22 }
  0x2b   :  { %289 = vmatpush.xpose.msra.mxu3 %v84_v23  ;;  %131 = vmatpush.xpose.msra.mxu0 %v84_v23 }
  0x2d   :  { %190 = vmatpush.xpose.msra.mxu2 %v115_v24 }
  0x2e   :  { %161 = vmatpush.xpose.msra.mxu1 %v99_v25 }
  0x2f   :  { %290 = vmatpush.xpose.msra.mxu3 %v83_v26  ;;  %132 = vmatpush.xpose.msra.mxu0 %v83_v26 }
  0x31   :  { %191 = vmatpush.xpose.msra.mxu2 %v114_v27 }
  0x32   :  { %162 = vmatpush.xpose.msra.mxu1 %v98_v28 }
  0x33   :  { %291 = vmatpush.xpose.msra.mxu3 %v82_v29  ;;  %133 = vmatpush.xpose.msra.mxu0 %v82_v29 }
  0x35   :  { %192 = vmatpush.xpose.msra.mxu2 %v113_v30 }
  0x36   :  { %163 = vmatpush.xpose.msra.mxu1 %v97_v31 }
  0x37   :  { %292 = vmatpush.xpose.msra.mxu3 %v81_v32  ;;  %134 = vmatpush.xpose.msra.mxu0 %v81_v32 }
  0x39   :  { %193 = vmatpush.xpose.msra.mxu2 %v112_v33 }
  0x3a   :  { %164 = vmatpush.xpose.msra.mxu1 %v96_v34 }
  0x3b   :  { %293 = vmatpush.xpose.msra.mxu3 %v80_v35  ;;  %135 = vmatpush.xpose.msra.mxu0 %v80_v35 }
  0x3d   :  { %194 = vmatpush.xpose.msra.mxu2 %v111_v36 }
  0x3e   :  { %165 = vmatpush.xpose.msra.mxu1 %v95_v37 }
  0x3f   :  { %294 = vmatpush.xpose.msra.mxu3 %v79_v38  ;;  %136 = vmatpush.xpose.msra.mxu0 %v79_v38 }
  0x41   :  { %195 = vmatpush.xpose.msra.mxu2 %v110_v39 }
  0x42   :  { %166 = vmatpush.xpose.msra.mxu1 %v94_v40 }
  0x43   :  { %295 = vmatpush.xpose.msra.mxu3 %v78_v41  ;;  %137 = vmatpush.xpose.msra.mxu0 %v78_v41 }
  0x45   :  { %196 = vmatpush.xpose.msra.mxu2 %v109_v42 }
  0x46   :  { %167 = vmatpush.xpose.msra.mxu1 %v93_v43 }
  0x47   :  { %296 = vmatpush.xpose.msra.mxu3 %v77_v44  ;;  %138 = vmatpush.xpose.msra.mxu0 %v77_v44 }
  0x49   :  { %197 = vmatpush.xpose.msra.mxu2 %v108_v45 }
  0x4a   :  { %168 = vmatpush.xpose.msra.mxu1 %v92_v46 }
  0x4b   :  { %297 = vmatpush.xpose.msra.mxu3 %v76_v47  ;;  %139 = vmatpush.xpose.msra.mxu0 %v76_v47 }
  0x4c   :  { %198 = vmatmul.f32.vlgmr.msra.gmra.mxu2 %v72_v48 }
  0x4d   :  { %169 = vmatmul.f32.vlgmr.msra.gmra.mxu1 %v72_v48 }
  0x4e   :  { %143 = vmatmul.f32.vlgmr.msra.gmra.mxu3 %v73_v49  ;;  %140 = vmatmul.f32.vlgmr.msra.gmra.mxu0 %v72_v48 }
  0x54   :  { %201 = vmatmul.f32.gmra.mxu2 %v73_v49 }
  0x55   :  { %172 = vmatmul.f32.gmra.mxu1 %v73_v49 }
  0x56   :  { %146 = vmatmul.f32.gmra.mxu3 %v74_v50 }
  0x5c   :  { %204 = vmatmul.f32.gmra.mxu2 %v74_v50 }
  0x5d   :  { %175 = vmatmul.f32.gmra.mxu1 %v74_v50 }
  0x5e   :  { %149 = vmatmul.f32.gmra.mxu3 %v75_v51 }
  0x64   :  { %207 = vmatmul.f32.gmra.mxu2 %v75_v51 }
  0x65   :  { %178 = vmatmul.f32.gmra.mxu1 %v75_v51 }
  0xca   :  { %v170_v52 = vpop.f32.mrf.mxu1 }
  0xcb   :  { %251 = vst [vmem:[#allocation8 + $0x8] sm:$0xff] %v170_v52  ;;  %v141_v53 = vpop.f32.mrf.mxu0 }
  0xcc   :  { %250 = vst [vmem:[#allocation8] sm:$0xff] %v141_v53 }
  0xcf   :  { %v199_v54 = vpop.f32.mrf.mxu2 }
  0xd0   :  { %252 = vst [vmem:[#allocation8 + $0x10] sm:$0xff] %v199_v54 }
  0xd1   :  { %v144_v55 = vpop.f32.mrf.mxu3 }
  0xd2   :  { %253 = vst [vmem:[#allocation8 + $0x18] sm:$0xff] %v144_v55  ;;  %v173_v56 = vpop.f32.mrf.mxu1 }
  0xd3   :  { %254 = vst [vmem:[#allocation8 + $0x20] sm:$0xff] %v173_v56 }
  0xd7   :  { %v202_v57 = vpop.f32.mrf.mxu2 }
  0xd8   :  { %255 = vst [vmem:[#allocation8 + $0x28] sm:$0xff] %v202_v57 }
  0xd9   :  { %v147_v58 = vpop.f32.mrf.mxu3 }
  0xda   :  { %256 = vst [vmem:[#allocation8 + $0x30] sm:$0xff] %v147_v58  ;;  %v176_v59 = vpop.f32.mrf.mxu1 }
  0xdb   :  { %257 = vst [vmem:[#allocation8 + $0x38] sm:$0xff] %v176_v59 }
  0xdf   :  { %v205_v60 = vpop.f32.mrf.mxu2 }
  0xe0   :  { %258 = vst [vmem:[#allocation8 + $0x40] sm:$0xff] %v205_v60 }
  0xe1   :  { %v150_v61 = vpop.f32.mrf.mxu3 }
  0xe2   :  { %259 = vst [vmem:[#allocation8 + $0x48] sm:$0xff] %v150_v61  ;;  %v179_v62 = vpop.f32.mrf.mxu1 }
  0xe3   :  { %260 = vst [vmem:[#allocation8 + $0x50] sm:$0xff] %v179_v62 }
  0xe7   :  { %v208_v63 = vpop.f32.mrf.mxu2 }
  0xe8   :  { %261 = vst [vmem:[#allocation8 + $0x58] sm:$0xff] %v208_v63 }
  0xe9   :  { %274 = dma.vmem_to_hbm [thread:$0]  %s267_s1, 1536, %s269_s23, [#allocation5], %s388_s24, %s388_s24, %s389_s25  }
  0xea   :  { %381 = dma.done.wait [#allocation5], 1536  }
  0xeb   :  { %382 = vsyncadd [#allocation5], 4294965760 }
  0xec   :  { %279 = vsyncpa [#allocation4], 1 }
  0xed   :  { %280 = vsyncpa [#allocation7], 1 }
  0xee   :  { %281 = vsyncpa [#allocation5], 1 }

</bundles_post_ra>
